<compile_context>
chip_gen: v7x
topology: tpu7x:2x2x1
jax: 0.10.0
libtpu: 0.0.40
codegen_flags: <defaults>
</compile_context>

<pallas_src>
import functools

import jax
import jax.numpy as jnp
from jax import lax
from jax.experimental import pallas as pl
from jax.experimental.pallas import tpu as pltpu

# ---- model dims (small, consistent with the forward) ------------------------
B, T, N, F = 2, 8, 16, 4        # batch, time steps, graph nodes, input features
H = 32                          # encoder hidden size
HORIZON, OUT = 3, 4             # decoder horizon and output features
HO = HORIZON * OUT


# ---------------------------- Pallas kernel ----------------------------------
def unimodel_kernel(t_steps, bn,
                    x_ref, a_ref, wih_ref, whh_ref, bh_ref,
                    wg_ref, bg_ref, wro_ref, bro_ref,
                    out_ref, xp_ref):
    # x_ref : [T*B*N, F]        a_ref : [B*N, B*N] block-diag normalized adjacency
    # xp_ref: [T*B*N, H] scratch for the hoisted input projection
    hid = whh_ref.shape[0]

    # Hoisted weight / bias loads (done once, not re-emitted per unrolled step).
    w_hh = whh_ref[...].astype(jnp.bfloat16)          # bf16 MXU operand, f32 accumulate
    b_h = bh_ref[...]                                  # [1, H]

    # ---- encoder: input projection for ALL timesteps in one off-critical-path dot ----
    xp_ref[...] = (jnp.dot(x_ref[...], wih_ref[...],
                           preferred_element_type=jnp.float32) + b_h)   # [T*BN, H]

    # ---- encoder: serial hidden recurrence (only h @ W_hh on the critical path) ----
    h0 = jnp.zeros((bn, hid), jnp.float32)

    def step(t, h):
        row = pl.multiple_of(t * bn, bn)               # sublane-aligned dynamic slice
        xt = xp_ref[pl.ds(row, bn), :]                 # [BN, H]
        hh = jnp.dot(h.astype(jnp.bfloat16), w_hh,
                     preferred_element_type=jnp.float32)
        return jnp.tanh(xt + hh)                       # elementwise stays f32 (v5e-safe)

    h = lax.fori_loop(0, t_steps, step, h0, unroll=True)   # [BN, H] (last hidden state)

    # ---- decoder: GCN conv + ReLU + linear readout, fused across the batch ----
    # Block-diagonal adjacency makes the aggregation a single dot for the whole batch.
    a = a_ref[...].astype(jnp.bfloat16)
    agg = jnp.dot(a, h.astype(jnp.bfloat16),
                  preferred_element_type=jnp.float32)                    # [BN, H]
    g = jnp.maximum(
        jnp.dot(agg.astype(jnp.bfloat16), wg_ref[...].astype(jnp.bfloat16),
                preferred_element_type=jnp.float32) + bg_ref[...], 0.0)  # [BN, H]
    out_ref[...] = (jnp.dot(g.astype(jnp.bfloat16), wro_ref[...].astype(jnp.bfloat16),
                            preferred_element_type=jnp.float32)
                    + bro_ref[...])                                      # [BN, HO], one store


# ------------------------------ glue / wrapper --------------------------------
def precompute_graph(edges, weights, n, b):
    """Static-graph glue, computed ONCE and cached outside the per-forward hot path.
    Dense GCN-normalized adjacency (self loops + symmetric D^-1/2 A D^-1/2), replicated
    block-diagonally across the batch so the kernel aggregates all batches in one dot."""
    a = jnp.zeros((n, n), jnp.float32).at[edges[0], edges[1]].add(weights)
    a = a + jnp.eye(n, dtype=jnp.float32)
    deg = jnp.sum(a, axis=1)
    dinv = jnp.where(deg > 0, lax.rsqrt(deg), 0.0)
    a_norm = a * dinv[:, None] * dinv[None, :]
    return jnp.kron(jnp.eye(b, dtype=jnp.float32), a_norm)      # [B*N, B*N]


@jax.jit
def uni_model_forward(x, a_bd, params):
    """x: [B,T,N,F] f32, a_bd: [B*N,B*N] precomputed block-diag normalized adjacency."""
    b, t, n, f = x.shape
    w_ih, w_hh, b_h, w_g, b_g, w_ro, b_ro = params

    # [B,T,N,F] -> [T*B*N, F]  (row = t*B*N + b*N + n)
    x_t = jnp.transpose(x, (1, 0, 2, 3)).reshape(t * b * n, f)

    out = pl.pallas_call(
        functools.partial(unimodel_kernel, t, b * n),
        out_shape=jax.ShapeDtypeStruct((b * n, HO), jnp.float32),
        in_specs=[pl.BlockSpec(memory_space=pltpu.MemorySpace.VMEM)] * 9,
        out_specs=pl.BlockSpec(memory_space=pltpu.MemorySpace.VMEM),
        scratch_shapes=[pltpu.VMEM((t * b * n, H), jnp.float32)],
    )(x_t, a_bd, w_ih, w_hh, b_h, w_g, b_g, w_ro, b_ro)

    # 'b n (h f) -> b h n f'
    return out.reshape(b, n, HORIZON, OUT).transpose(0, 2, 1, 3)


# --------------------------- deterministic init -------------------------------
def xavier_uniform(key, shape):
    fan_in, fan_out = shape[0], shape[-1]
    limit = (6.0 / (fan_in + fan_out)) ** 0.5
    return jax.random.uniform(key, shape, jnp.float32, -limit, limit)


def make_params(key):
    ks = jax.random.split(key, 4)
    w_ih = xavier_uniform(ks[0], (F, H))
    w_hh = xavier_uniform(ks[1], (H, H))
    b_h = jnp.zeros((1, H), jnp.float32)     # = b_ih + b_hh of torch nn.RNN
    w_g = xavier_uniform(ks[2], (H, H))
    b_g = jnp.zeros((1, H), jnp.float32)
    w_ro = xavier_uniform(ks[3], (H, HO))
    b_ro = jnp.zeros((1, HO), jnp.float32)
    return (w_ih, w_hh, b_h, w_g, b_g, w_ro, b_ro)


if __name__ == "__main__":
    key = jax.random.PRNGKey(0)
    k_x, k_w, k_p = jax.random.split(key, 3)

    x = jax.random.normal(k_x, (B, T, N, F), jnp.float32)

    # simple bidirectional ring graph over the N nodes
    src = jnp.arange(N, dtype=jnp.int32)
    dst = (src + 1) % N
    edges = jnp.concatenate(
        [jnp.stack([src, dst]), jnp.stack([dst, src])], axis=1)     # [2, 2N]
    weights = jax.random.uniform(k_w, (edges.shape[1],), jnp.float32, 0.1, 1.0)

    params = make_params(k_p)

    # static graph: build the normalized block-diagonal adjacency once, off the hot path
    a_bd = jax.block_until_ready(precompute_graph(edges, weights, N, B))

    y = uni_model_forward(x, a_bd, params)
    jax.block_until_ready(y)
    assert y.shape == (B, HORIZON, N, OUT)
    print("KERNEL_OK")
</pallas_src>

<mosaic_0001>
module attributes {stable_mosaic.version = 11 : i64} {
  func.func @unimodel_kernel(%arg0: memref<256x4xf32, #tpu.memory_space<vmem>>, %arg1: memref<32x32xf32, #tpu.memory_space<vmem>>, %arg2: memref<4x32xf32, #tpu.memory_space<vmem>>, %arg3: memref<32x32xf32, #tpu.memory_space<vmem>>, %arg4: memref<1x32xf32, #tpu.memory_space<vmem>>, %arg5: memref<32x32xf32, #tpu.memory_space<vmem>>, %arg6: memref<1x32xf32, #tpu.memory_space<vmem>>, %arg7: memref<32x12xf32, #tpu.memory_space<vmem>>, %arg8: memref<1x12xf32, #tpu.memory_space<vmem>>, %arg9: memref<32x12xf32, #tpu.memory_space<vmem>>, %arg10: memref<256x32xf32, #tpu.memory_space<vmem>>) attributes {dimension_semantics = [], scalar_prefetch = 0 : i64, scratch_operands = 1 : i64, tpu.core_type = #tpu.core_type<tc>} {
    %c0 = arith.constant 0 : index
    %c0_0 = arith.constant 0 : index
    %0 = vector.load %arg3[%c0, %c0_0] : memref<32x32xf32, #tpu.memory_space<vmem>>, vector<32x32xf32>
    %1 = arith.truncf %0 : vector<32x32xf32> to vector<32x32xbf16>
    %c0_1 = arith.constant 0 : index
    %c0_2 = arith.constant 0 : index
    %2 = vector.load %arg4[%c0_1, %c0_2] : memref<1x32xf32, #tpu.memory_space<vmem>>, vector<1x32xf32>
    %c0_3 = arith.constant 0 : index
    %c0_4 = arith.constant 0 : index
    %3 = vector.load %arg0[%c0_3, %c0_4] : memref<256x4xf32, #tpu.memory_space<vmem>>, vector<256x4xf32>
    %c0_5 = arith.constant 0 : index
    %c0_6 = arith.constant 0 : index
    %4 = vector.load %arg2[%c0_5, %c0_6] : memref<4x32xf32, #tpu.memory_space<vmem>>, vector<4x32xf32>
    %cst = arith.constant dense<0.000000e+00> : vector<256x32xf32>
    %5 = tpu.matmul %3, %4, %cst {dimension_numbers = #tpu.dot_dimension_numbers<[1], [0], [0], [1], [0, 0, 1, 1], [], []>} : vector<256x4xf32>, vector<4x32xf32>, vector<256x32xf32> -> vector<256x32xf32>
    %6 = vector.broadcast %2 : vector<1x32xf32> to vector<256x32xf32>
    %7 = arith.addf %5, %6 : vector<256x32xf32>
    %c0_7 = arith.constant 0 : index
    %c0_8 = arith.constant 0 : index
    %8 = vector.load %arg10[%c0_7, %c0_8] : memref<256x32xf32, #tpu.memory_space<vmem>>, vector<256x32xf32>
    tpu.vector_store %arg10[%c0_7, %c0_8], %7 {strides = array<i32>} : memref<256x32xf32, #tpu.memory_space<vmem>>, vector<256x32xf32>,
    %cst_9 = arith.constant 0.000000e+00 : f32
    %9 = vector.broadcast %cst_9 : f32 to vector<32x32xf32>
    %c0_i32 = arith.constant 0 : i32
    %c32_i32 = arith.constant 32 : i32
    %10 = arith.muli %c0_i32, %c32_i32 : i32
    %11 = tpu.assume_multiple %10, 32 : i32
    %12 = arith.index_cast %11 : i32 to index
    %c0_10 = arith.constant 0 : index
    %13 = vector.load %arg10[%12, %c0_10] : memref<256x32xf32, #tpu.memory_space<vmem>>, vector<32x32xf32>
    %14 = arith.truncf %9 : vector<32x32xf32> to vector<32x32xbf16>
    %cst_11 = arith.constant dense<0.000000e+00> : vector<32x32xf32>
    %15 = tpu.matmul %14, %1, %cst_11 {dimension_numbers = #tpu.dot_dimension_numbers<[1], [0], [0], [1], [0, 0, 1, 1], [], []>} : vector<32x32xbf16>, vector<32x32xbf16>, vector<32x32xf32> -> vector<32x32xf32>
    %16 = arith.addf %13, %15 : vector<32x32xf32>
    %17 = math.tanh %16 : vector<32x32xf32>
    %c1_i32 = arith.constant 1 : i32
    %c32_i32_12 = arith.constant 32 : i32
    %18 = arith.muli %c1_i32, %c32_i32_12 : i32
    %19 = tpu.assume_multiple %18, 32 : i32
    %20 = arith.index_cast %19 : i32 to index
    %c0_13 = arith.constant 0 : index
    %21 = vector.load %arg10[%20, %c0_13] : memref<256x32xf32, #tpu.memory_space<vmem>>, vector<32x32xf32>
    %22 = arith.truncf %17 : vector<32x32xf32> to vector<32x32xbf16>
    %cst_14 = arith.constant dense<0.000000e+00> : vector<32x32xf32>
    %23 = tpu.matmul %22, %1, %cst_14 {dimension_numbers = #tpu.dot_dimension_numbers<[1], [0], [0], [1], [0, 0, 1, 1], [], []>} : vector<32x32xbf16>, vector<32x32xbf16>, vector<32x32xf32> -> vector<32x32xf32>
    %24 = arith.addf %21, %23 : vector<32x32xf32>
    %25 = math.tanh %24 : vector<32x32xf32>
    %c2_i32 = arith.constant 2 : i32
    %c32_i32_15 = arith.constant 32 : i32
    %26 = arith.muli %c2_i32, %c32_i32_15 : i32
    %27 = tpu.assume_multiple %26, 32 : i32
    %28 = arith.index_cast %27 : i32 to index
    %c0_16 = arith.constant 0 : index
    %29 = vector.load %arg10[%28, %c0_16] : memref<256x32xf32, #tpu.memory_space<vmem>>, vector<32x32xf32>
    %30 = arith.truncf %25 : vector<32x32xf32> to vector<32x32xbf16>
    %cst_17 = arith.constant dense<0.000000e+00> : vector<32x32xf32>
    %31 = tpu.matmul %30, %1, %cst_17 {dimension_numbers = #tpu.dot_dimension_numbers<[1], [0], [0], [1], [0, 0, 1, 1], [], []>} : vector<32x32xbf16>, vector<32x32xbf16>, vector<32x32xf32> -> vector<32x32xf32>
    %32 = arith.addf %29, %31 : vector<32x32xf32>
    %33 = math.tanh %32 : vector<32x32xf32>
    %c3_i32 = arith.constant 3 : i32
    %c32_i32_18 = arith.constant 32 : i32
    %34 = arith.muli %c3_i32, %c32_i32_18 : i32
    %35 = tpu.assume_multiple %34, 32 : i32
    %36 = arith.index_cast %35 : i32 to index
    %c0_19 = arith.constant 0 : index
    %37 = vector.load %arg10[%36, %c0_19] : memref<256x32xf32, #tpu.memory_space<vmem>>, vector<32x32xf32>
    %38 = arith.truncf %33 : vector<32x32xf32> to vector<32x32xbf16>
    %cst_20 = arith.constant dense<0.000000e+00> : vector<32x32xf32>
    %39 = tpu.matmul %38, %1, %cst_20 {dimension_numbers = #tpu.dot_dimension_numbers<[1], [0], [0], [1], [0, 0, 1, 1], [], []>} : vector<32x32xbf16>, vector<32x32xbf16>, vector<32x32xf32> -> vector<32x32xf32>
    %40 = arith.addf %37, %39 : vector<32x32xf32>
    %41 = math.tanh %40 : vector<32x32xf32>
    %c4_i32 = arith.constant 4 : i32
    %c32_i32_21 = arith.constant 32 : i32
    %42 = arith.muli %c4_i32, %c32_i32_21 : i32
    %43 = tpu.assume_multiple %42, 32 : i32
    %44 = arith.index_cast %43 : i32 to index
    %c0_22 = arith.constant 0 : index
    %45 = vector.load %arg10[%44, %c0_22] : memref<256x32xf32, #tpu.memory_space<vmem>>, vector<32x32xf32>
    %46 = arith.truncf %41 : vector<32x32xf32> to vector<32x32xbf16>
    %cst_23 = arith.constant dense<0.000000e+00> : vector<32x32xf32>
    %47 = tpu.matmul %46, %1, %cst_23 {dimension_numbers = #tpu.dot_dimension_numbers<[1], [0], [0], [1], [0, 0, 1, 1], [], []>} : vector<32x32xbf16>, vector<32x32xbf16>, vector<32x32xf32> -> vector<32x32xf32>
    %48 = arith.addf %45, %47 : vector<32x32xf32>
    %49 = math.tanh %48 : vector<32x32xf32>
    %c5_i32 = arith.constant 5 : i32
    %c32_i32_24 = arith.constant 32 : i32
    %50 = arith.muli %c5_i32, %c32_i32_24 : i32
    %51 = tpu.assume_multiple %50, 32 : i32
    %52 = arith.index_cast %51 : i32 to index
    %c0_25 = arith.constant 0 : index
    %53 = vector.load %arg10[%52, %c0_25] : memref<256x32xf32, #tpu.memory_space<vmem>>, vector<32x32xf32>
    %54 = arith.truncf %49 : vector<32x32xf32> to vector<32x32xbf16>
    %cst_26 = arith.constant dense<0.000000e+00> : vector<32x32xf32>
    %55 = tpu.matmul %54, %1, %cst_26 {dimension_numbers = #tpu.dot_dimension_numbers<[1], [0], [0], [1], [0, 0, 1, 1], [], []>} : vector<32x32xbf16>, vector<32x32xbf16>, vector<32x32xf32> -> vector<32x32xf32>
    %56 = arith.addf %53, %55 : vector<32x32xf32>
    %57 = math.tanh %56 : vector<32x32xf32>
    %c6_i32 = arith.constant 6 : i32
    %c32_i32_27 = arith.constant 32 : i32
    %58 = arith.muli %c6_i32, %c32_i32_27 : i32
    %59 = tpu.assume_multiple %58, 32 : i32
    %60 = arith.index_cast %59 : i32 to index
    %c0_28 = arith.constant 0 : index
    %61 = vector.load %arg10[%60, %c0_28] : memref<256x32xf32, #tpu.memory_space<vmem>>, vector<32x32xf32>
    %62 = arith.truncf %57 : vector<32x32xf32> to vector<32x32xbf16>
    %cst_29 = arith.constant dense<0.000000e+00> : vector<32x32xf32>
    %63 = tpu.matmul %62, %1, %cst_29 {dimension_numbers = #tpu.dot_dimension_numbers<[1], [0], [0], [1], [0, 0, 1, 1], [], []>} : vector<32x32xbf16>, vector<32x32xbf16>, vector<32x32xf32> -> vector<32x32xf32>
    %64 = arith.addf %61, %63 : vector<32x32xf32>
    %65 = math.tanh %64 : vector<32x32xf32>
    %c7_i32 = arith.constant 7 : i32
    %c32_i32_30 = arith.constant 32 : i32
    %66 = arith.muli %c7_i32, %c32_i32_30 : i32
    %67 = tpu.assume_multiple %66, 32 : i32
    %68 = arith.index_cast %67 : i32 to index
    %c0_31 = arith.constant 0 : index
    %69 = vector.load %arg10[%68, %c0_31] : memref<256x32xf32, #tpu.memory_space<vmem>>, vector<32x32xf32>
    %70 = arith.truncf %65 : vector<32x32xf32> to vector<32x32xbf16>
    %cst_32 = arith.constant dense<0.000000e+00> : vector<32x32xf32>
    %71 = tpu.matmul %70, %1, %cst_32 {dimension_numbers = #tpu.dot_dimension_numbers<[1], [0], [0], [1], [0, 0, 1, 1], [], []>} : vector<32x32xbf16>, vector<32x32xbf16>, vector<32x32xf32> -> vector<32x32xf32>
    %72 = arith.addf %69, %71 : vector<32x32xf32>
    %73 = math.tanh %72 : vector<32x32xf32>
    %c8_i32 = arith.constant 8 : i32
    %c0_33 = arith.constant 0 : index
    %c0_34 = arith.constant 0 : index
    %74 = vector.load %arg1[%c0_33, %c0_34] : memref<32x32xf32, #tpu.memory_space<vmem>>, vector<32x32xf32>
    %75 = arith.truncf %74 : vector<32x32xf32> to vector<32x32xbf16>
    %76 = arith.truncf %73 : vector<32x32xf32> to vector<32x32xbf16>
    %cst_35 = arith.constant dense<0.000000e+00> : vector<32x32xf32>
    %77 = tpu.matmul %75, %76, %cst_35 {dimension_numbers = #tpu.dot_dimension_numbers<[1], [0], [0], [1], [0, 0, 1, 1], [], []>} : vector<32x32xbf16>, vector<32x32xbf16>, vector<32x32xf32> -> vector<32x32xf32>
    %78 = arith.truncf %77 : vector<32x32xf32> to vector<32x32xbf16>
    %c0_36 = arith.constant 0 : index
    %c0_37 = arith.constant 0 : index
    %79 = vector.load %arg5[%c0_36, %c0_37] : memref<32x32xf32, #tpu.memory_space<vmem>>, vector<32x32xf32>
    %80 = arith.truncf %79 : vector<32x32xf32> to vector<32x32xbf16>
    %cst_38 = arith.constant dense<0.000000e+00> : vector<32x32xf32>
    %81 = tpu.matmul %78, %80, %cst_38 {dimension_numbers = #tpu.dot_dimension_numbers<[1], [0], [0], [1], [0, 0, 1, 1], [], []>} : vector<32x32xbf16>, vector<32x32xbf16>, vector<32x32xf32> -> vector<32x32xf32>
    %c0_39 = arith.constant 0 : index
    %c0_40 = arith.constant 0 : index
    %82 = vector.load %arg6[%c0_39, %c0_40] : memref<1x32xf32, #tpu.memory_space<vmem>>, vector<1x32xf32>
    %83 = vector.broadcast %82 : vector<1x32xf32> to vector<32x32xf32>
    %84 = arith.addf %81, %83 : vector<32x32xf32>
    %cst_41 = arith.constant 0.000000e+00 : f32
    %85 = vector.broadcast %cst_41 : f32 to vector<32x32xf32>
    %86 = arith.maximumf %84, %85 : vector<32x32xf32>
    %87 = arith.truncf %86 : vector<32x32xf32> to vector<32x32xbf16>
    %c0_42 = arith.constant 0 : index
    %c0_43 = arith.constant 0 : index
    %88 = vector.load %arg7[%c0_42, %c0_43] : memref<32x12xf32, #tpu.memory_space<vmem>>, vector<32x12xf32>
    %89 = arith.truncf %88 : vector<32x12xf32> to vector<32x12xbf16>
    %cst_44 = arith.constant dense<0.000000e+00> : vector<32x12xf32>
    %90 = tpu.matmul %87, %89, %cst_44 {dimension_numbers = #tpu.dot_dimension_numbers<[1], [0], [0], [1], [0, 0, 1, 1], [], []>} : vector<32x32xbf16>, vector<32x12xbf16>, vector<32x12xf32> -> vector<32x12xf32>
    %c0_45 = arith.constant 0 : index
    %c0_46 = arith.constant 0 : index
    %91 = vector.load %arg8[%c0_45, %c0_46] : memref<1x12xf32, #tpu.memory_space<vmem>>, vector<1x12xf32>
    %92 = vector.broadcast %91 : vector<1x12xf32> to vector<32x12xf32>
    %93 = arith.addf %90, %92 : vector<32x12xf32>
    %c0_47 = arith.constant 0 : index
    %c0_48 = arith.constant 0 : index
    %94 = vector.load %arg9[%c0_47, %c0_48] : memref<32x12xf32, #tpu.memory_space<vmem>>, vector<32x12xf32>
    tpu.vector_store %arg9[%c0_47, %c0_48], %93 {strides = array<i32>} : memref<32x12xf32, #tpu.memory_space<vmem>>, vector<32x12xf32>,
    return
  }
}

</mosaic_0001>

<bundles_post_ra>
// kernel: uni_model_forward.1
= control target key start
LH: loop header
LB: loop body
LE: loop exit
PB: predicated region body
PF: predicated region fallthrough
CT: control target
= control target key end

     0   :  { %vm176_vm0 = vcmask 1043456   ;;  %vm79_vm1 = vcmask 31744   ;;  %v1544_v3 = vmov 0   ;;  %vm405_vm2 = vcmask 261120   ;;  %s1917_s2 = inlined_call_operand.vmem [shape: f32[4,32], index: 2, kind: input, shape index: {}]   ;;  %s1918_s0 = inlined_call_operand.vmem [shape: f32[256,4], index: 0, kind: input, shape index: {}]   ;;  %s1919_s3 = inlined_call_operand.vmem [shape: f32[32,32], index: 3, kind: input, shape index: {}]   ;;  %s1920_s4 = inlined_call_operand.vmem [shape: f32[1,32], index: 4, kind: input, shape index: {}]   ;;  %s1921_s1 = inlined_call_operand.vmem [shape: f32[32,32], index: 1, kind: input, shape index: {}]   ;;  %s1922_s5 = inlined_call_operand.vmem [shape: f32[32,32], index: 5, kind: input, shape index: {}]   ;;  %s1923_s7 = inlined_call_operand.vmem [shape: f32[32,12], index: 7, kind: input, shape index: {}]   ;;  %s1924_s6 = inlined_call_operand.vmem [shape: f32[1,32], index: 6, kind: input, shape index: {}]   ;;  %s1925_s8 = inlined_call_operand.vmem [shape: f32[1,12], index: 8, kind: input, shape index: {}]   ;;  %s1926_s9 = inlined_call_operand.vmem [shape: f32[32,12], index: 9, kind: output, shape index: {}]  }
   0x1   :  { %v72_v0 = vld [vmem:[%s1917_s2] sm:$0xf]  ;;  %v41_v2 = vld [vmem:[%s1918_s0 + $0x8] sm:$0xff]  ;;  %1395 = vmatprep.mubr.bf16.mxu1 %v1544_v3  ;;  %v42_v6 = vld [vmem:[%s1918_s0 + $0x10] sm:$0xff]  ;;  %vm1199_vm3 = vcmask 97280  }
   0x2   :  { %v40_v1 = vld [vmem:[%s1918_s0] sm:$0xff]  ;;  %1341 = vmatprep.subr.msk.mxu0 %vm176_vm0, %v72_v0  ;;  %v34_v5 = vld [vmem:[%s1919_s3 + $0x8] sm:$0xff]  ;;  %v35_v8 = vld [vmem:[%s1919_s3 + $0x10] sm:$0xff] }
   0x3   :  { %1343 = vmatprep.mubr.msk.f32.mxu0 %vm79_vm1, %v40_v1  ;;  %v33_v4 = vld [vmem:[%s1919_s3] sm:$0xff]  ;;  %1342 = vmatpush3.msk.msra.mxu0 %vm176_vm0, %v72_v0  ;;  %v36_v9 = vld [vmem:[%s1919_s3 + $0x18] sm:$0xff]  ;;  %v45_v13 = vld [vmem:[%s1918_s0 + $0x28] sm:$0xff] }
   0x4   :  { %v1614_v7 = vpack.c.bf16 %v34_v5, %v33_v4  ;;  %1344 = vmatmul.mubr.msk.f32.vlgmr.msra.gmra.mrb[0].mxu0 %vm79_vm1, %v41_v2  ;;  %v1623_v10 = vpack.c.bf16 %v36_v9, %v35_v8  ;;  %v43_v11 = vld [vmem:[%s1918_s0 + $0x18] sm:$0xff]  ;;  %v44_v12 = vld [vmem:[%s1918_s0 + $0x20] sm:$0xff]  ;;  %v46_v14 = vld [vmem:[%s1918_s0 + $0x30] sm:$0xff] }
   0x5   :  { %1346 = vmatprep.mubr.msk.f32.mxu0 %vm79_vm1, %v42_v6  ;;  %v47_v15 = vld [vmem:[%s1918_s0 + $0x38] sm:$0xff]  ;;  %v1658_v16 = vld [vmem:[%s1920_s4] ss:$0 sm:$0xff]  ;;  %v49_v52 = vld [vmem:[%s1918_s0 + $0x48] sm:$0xff] }
   0x6   :  { %1391 = vmatprep.subr.bf16.mxu1 %v1614_v7  ;;  %v48_v51 = vld [vmem:[%s1918_s0 + $0x40] sm:$0xff]  ;;  %v50_v53 = vld [vmem:[%s1918_s0 + $0x50] sm:$0xff]  ;;  %v51_v54 = vld [vmem:[%s1918_s0 + $0x58] sm:$0xff] }
   0x7   :  { %1392 = vmatpush3.bf16.msra.mxu1 %v1614_v7 }
   0x8   :  { %1393 = vmatprep.subr.bf16.mxu1 %v1623_v10  ;;  %1347 = vmatmul.mubr.msk.f32.gmra.mrb[2].mxu0 %vm79_vm1, %v43_v11 }
   0x9   :  { %1349 = vmatprep.mubr.msk.f32.mxu0 %vm79_vm1, %v44_v12 }
   0xb   :  { %1394 = vmatpush3.bf16.msra.mxu1 %v1623_v10 }
   0xc   :  { %1399 = vmatprep.subr.bf16.mxu1 %v1614_v7  ;;  %1350 = vmatmul.mubr.msk.f32.gmra.mrb[4].mxu0 %vm79_vm1, %v45_v13 }
   0xd   :  { %1352 = vmatprep.mubr.msk.f32.mxu0 %vm79_vm1, %v46_v14 }
   0xe   :  { %1396 = vmatmul.mubr.bf16.vlgmr.msra.gmra.mrb[0].mxu1 %v1544_v3 }
   0xf   :  { %1400 = vmatpush3.bf16.msra.mxu1 %v1614_v7 }
  0x10   :  { %1401 = vmatprep.subr.bf16.mxu1 %v1623_v10  ;;  %1353 = vmatmul.mubr.msk.f32.gmra.mrb[6].mxu0 %vm79_vm1, %v47_v15 }
  0x11   :  { %1355 = vmatprep.mubr.msk.f32.mxu0 %vm79_vm1, %v48_v51  ;;  %v57_v51 = vld [vmem:[%s1918_s0 + $0x88] sm:$0xff] }
  0x13   :  { %1402 = vmatpush3.bf16.msra.mxu1 %v1623_v10 }
  0x14   :  { %1407 = vmatprep.subr.bf16.mxu1 %v1614_v7  ;;  %1356 = vmatmul.mubr.msk.f32.gmra.mrb[8].mxu0 %vm79_vm1, %v49_v52  ;;  %v58_v52 = vld [vmem:[%s1918_s0 + $0x90] sm:$0xff] }
  0x15   :  { %1358 = vmatprep.mubr.msk.f32.mxu0 %vm79_vm1, %v50_v53  ;;  %v59_v53 = vld [vmem:[%s1918_s0 + $0x98] sm:$0xff] }
  0x18   :  { %1359 = vmatmul.mubr.msk.f32.gmra.mrb[10].mxu0 %vm79_vm1, %v51_v54 }
  0xd7   :  { %v1345_v17 = vpop.f32.mrb[0].mxu0 }
  0xd8   :  { %v252_v18 = vadd.f32 %v1345_v17, %v1658_v16  ;;  %v246_v19 = vpop.f32.mrb[1].mxu0 }
  0xd9   :  { %v247_v20 = vadd.f32 %v1658_v16, %v246_v19 }
  0xda   :  { %407 = vst.msk [vmem:[#allocation2 + $0x8] sm:$0xff] %vm405_vm2, %v252_v18 }
  0xdb   :  { %406 = vst.msk [vmem:[#allocation2] sm:$0xff] %vm405_vm2, %v247_v20  ;;  %v1348_v21 = vpop.f32.mrb[2].mxu0  ;;  %v52_v20 = vld [vmem:[%s1918_s0 + $0x60] sm:$0xff] }
  0xdc   :  { %v262_v22 = vadd.f32 %v1348_v21, %v1658_v16  ;;  %v256_v23 = vpop.f32.mrb[3].mxu0  ;;  %1361 = vmatprep.mubr.msk.f32.mxu0 %vm79_vm1, %v52_v20  ;;  %v53_v21 = vld [vmem:[%s1918_s0 + $0x68] sm:$0xff] }
  0xdd   :  { %v257_v24 = vadd.f32 %v1658_v16, %v256_v23  ;;  %1362 = vmatmul.mubr.msk.f32.gmra.mrb[12].mxu0 %vm79_vm1, %v53_v21  ;;  %v55_v23 = vld [vmem:[%s1918_s0 + $0x78] sm:$0xff]  ;;  %v61_v20 = vld [vmem:[%s1918_s0 + $0xa8] sm:$0xff]  ;;  %v62_v21 = vld [vmem:[%s1918_s0 + $0xb0] sm:$0xff] }
  0xde   :  { %409 = vst.msk [vmem:[#allocation2 + $0x18] sm:$0xff] %vm405_vm2, %v262_v22  ;;  %v54_v22 = vld [vmem:[%s1918_s0 + $0x70] sm:$0xff] }
  0xdf   :  { %408 = vst.msk [vmem:[#allocation2 + $0x10] sm:$0xff] %vm405_vm2, %v257_v24  ;;  %v1351_v43 = vpop.f32.mrb[4].mxu0  ;;  %1364 = vmatprep.mubr.msk.f32.mxu0 %vm79_vm1, %v54_v22  ;;  %v63_v22 = vld [vmem:[%s1918_s0 + $0xb8] sm:$0xff] }
  0xe0   :  { %v272_v44 = vadd.f32 %v1351_v43, %v1658_v16  ;;  %v266_v45 = vpop.f32.mrb[5].mxu0 }
  0xe1   :  { %v1397_v25 = vpop.f32.mrb[0].mxu1  ;;  %v439_v27 = vld [vmem:[#allocation2 + $0x8] sm:$0xff]  ;;  %v267_v46 = vadd.f32 %v1658_v16, %v266_v45  ;;  %1365 = vmatmul.mubr.msk.f32.gmra.mrb[14].mxu0 %vm79_vm1, %v55_v23 }
  0xe2   :  { %v479_v26 = vpop.f32.mrb[1].mxu1  ;;  %v438_v28 = vld [vmem:[#allocation2] sm:$0xff]  ;;  %411 = vst.msk [vmem:[#allocation2 + $0x28] sm:$0xff] %vm405_vm2, %v272_v44 }
  0xe3   :  { %v1398_v29 = vpop.f32.mrb[2].mxu1  ;;  %v494_v30 = vadd.f32 %v479_v26, %v438_v28  ;;  %410 = vst.msk [vmem:[#allocation2 + $0x20] sm:$0xff] %vm405_vm2, %v267_v46  ;;  %v1354_v47 = vpop.f32.mrb[6].mxu0 }
  0xe4   :  { %v482_v31 = vpop.f32.mrb[3].mxu1  ;;  %v282_v48 = vadd.f32 %v1354_v47, %v1658_v16  ;;  %v276_v49 = vpop.f32.mrb[7].mxu0 }
  0xe5   :  { %v495_v32 = vadd.f32 %v482_v31, %v439_v27  ;;  %1480 = vtanh.f32 %v494_v30  ;;  %v441_v33 = vld [vmem:[#allocation2 + $0x18] sm:$0xff]  ;;  %v277_v50 = vadd.f32 %v1658_v16, %v276_v49 }
  0xe6   :  { %v440_v34 = vld [vmem:[#allocation2 + $0x10] sm:$0xff]  ;;  %v497_v35 = vadd.f32 %v1398_v29, %v441_v33  ;;  %413 = vst.msk [vmem:[#allocation2 + $0x38] sm:$0xff] %vm405_vm2, %v282_v48 }
  0xe7   :  { %1482 = vtanh.f32 %v495_v32  ;;  %v496_v36 = vadd.f32 %v1397_v25, %v440_v34  ;;  %412 = vst.msk [vmem:[#allocation2 + $0x30] sm:$0xff] %vm405_vm2, %v277_v50  ;;  %v1357_v11 = vpop.f32.mrb[8].mxu0  ;;  %v56_v50 = vld [vmem:[%s1918_s0 + $0x80] sm:$0xff] }
  0xe8   :  { %1484 = vtanh.f32 %v497_v35  ;;  %v292_v12 = vadd.f32 %v1357_v11, %v1658_v16  ;;  %v286_v13 = vpop.f32.mrb[9].mxu0  ;;  %1367 = vmatprep.mubr.msk.f32.mxu0 %vm79_vm1, %v56_v50  ;;  %v65_v50 = vld [vmem:[%s1918_s0 + $0xc8] sm:$0xff] }
  0xe9   :  { %1486 = vtanh.f32 %v496_v36  ;;  %v504_v0 = vld [vmem:[#allocation2 + $0x28] sm:$0xff]  ;;  %v287_v14 = vadd.f32 %v1658_v16, %v286_v13  ;;  %1368 = vmatmul.mubr.msk.f32.gmra.mrb[16].mxu0 %vm79_vm1, %v57_v51  ;;  %v66_v51 = vld [vmem:[%s1918_s0 + $0xd0] sm:$0xff] }
  0xea   :  { %v503_v59 = vld [vmem:[#allocation2 + $0x20] sm:$0xff]  ;;  %415 = vst.msk [vmem:[#allocation2 + $0x48] sm:$0xff] %vm405_vm2, %v292_v12  ;;  %1370 = vmatprep.mubr.msk.f32.mxu0 %vm79_vm1, %v58_v52  ;;  %v67_v52 = vld [vmem:[%s1918_s0 + $0xd8] sm:$0xff] }
  0xeb   :  { %414 = vst.msk [vmem:[#allocation2 + $0x40] sm:$0xff] %vm405_vm2, %v287_v14  ;;  %v1360_v15 = vpop.f32.mrb[10].mxu0 }
  0xec   :  { %v302_v17 = vadd.f32 %v1360_v15, %v1658_v16  ;;  %v296_v18 = vpop.f32.mrb[11].mxu0 }
  0xed   :  { %v506_v57 = vld [vmem:[#allocation2 + $0x38] sm:$0xff]  ;;  %v297_v19 = vadd.f32 %v1658_v16, %v296_v18  ;;  %1371 = vmatmul.mubr.msk.f32.gmra.mrb[18].mxu0 %vm79_vm1, %v59_v53 }
  0xee   :  { %v505_v55 = vld [vmem:[#allocation2 + $0x30] sm:$0xff]  ;;  %417 = vst.msk [vmem:[#allocation2 + $0x58] sm:$0xff] %vm405_vm2, %v302_v17 }
  0xef   :  { %v1481_v37 = vpop.eup %1480  ;;  %416 = vst.msk [vmem:[#allocation2 + $0x50] sm:$0xff] %vm405_vm2, %v297_v19  ;;  %v60_v19 = vld [vmem:[%s1918_s0 + $0xa0] sm:$0xff] }
  0xf0   :  { %1373 = vmatprep.mubr.msk.f32.mxu0 %vm79_vm1, %v60_v19  ;;  %v71_v19 = vld [vmem:[%s1918_s0 + $0xf8] sm:$0xff] }
  0xf1   :  { %v1483_v38 = vpop.eup %1482  ;;  %v574_v33 = vld [vmem:[#allocation2 + $0x48] sm:$0xff]  ;;  %1374 = vmatmul.mubr.msk.f32.gmra.mrb[20].mxu0 %vm79_vm1, %v61_v20 }
  0xf2   :  { %v507_v39 = vpack.c.bf16 %v1483_v38, %v1481_v37  ;;  %v1485_v40 = vpop.eup %1484  ;;  %v573_v28 = vld [vmem:[#allocation2 + $0x40] sm:$0xff]  ;;  %1376 = vmatprep.mubr.msk.f32.mxu0 %vm79_vm1, %v62_v21 }
  0xf3   :  { %v1487_v41 = vpop.eup %1486 }
  0xf4   :  { %1403 = vmatprep.mubr.msk.bf16.mxu1 %vm405_vm2, %v507_v39  ;;  %v508_v42 = vpack.c.bf16 %v1485_v40, %v1487_v41 }
  0xf5   :  { %v576_v26 = vld [vmem:[#allocation2 + $0x58] sm:$0xff]  ;;  %1377 = vmatmul.mubr.msk.f32.gmra.mrb[22].mxu0 %vm79_vm1, %v63_v22 }
  0xf6   :  { %1404 = vmatmul.mubr.msk.bf16.vlgmr.msra.gmra.mrb[4].mxu1 %vm405_vm2, %v508_v42  ;;  %v575_v24 = vld [vmem:[#allocation2 + $0x50] sm:$0xff] }
  0xf7   :  { %1408 = vmatpush3.bf16.msra.mxu1 %v1614_v7 }
  0xf8   :  { %1409 = vmatprep.subr.bf16.mxu1 %v1623_v10 }
  0xfb   :  { %1410 = vmatpush3.bf16.msra.mxu1 %v1623_v10 }
  0xfc   :  { %1415 = vmatprep.subr.bf16.mxu1 %v1614_v7 }
 0x1b0   :  { %v1363_v42 = vpop.f32.mrb[12].mxu0 }
 0x1b1   :  { %v312_v43 = vadd.f32 %v1363_v42, %v1658_v16  ;;  %v306_v44 = vpop.f32.mrb[13].mxu0 }
 0x1b2   :  { %v307_v45 = vadd.f32 %v1658_v16, %v306_v44 }
 0x1b3   :  { %419 = vst.msk [vmem:[#allocation2 + $0x68] sm:$0xff] %vm405_vm2, %v312_v43 }
 0x1b4   :  { %418 = vst.msk [vmem:[#allocation2 + $0x60] sm:$0xff] %vm405_vm2, %v307_v45  ;;  %v1366_v46 = vpop.f32.mrb[14].mxu0 }
 0x1b5   :  { %v322_v47 = vadd.f32 %v1366_v46, %v1658_v16  ;;  %v316_v48 = vpop.f32.mrb[15].mxu0 }
 0x1b6   :  { %v317_v49 = vadd.f32 %v1658_v16, %v316_v48 }
 0x1b7   :  { %421 = vst.msk [vmem:[#allocation2 + $0x78] sm:$0xff] %vm405_vm2, %v322_v47 }
 0x1b8   :  { %420 = vst.msk [vmem:[#allocation2 + $0x70] sm:$0xff] %vm405_vm2, %v317_v49  ;;  %v64_v49 = vld [vmem:[%s1918_s0 + $0xc0] sm:$0xff] }
 0x1b9   :  { %1379 = vmatprep.mubr.msk.f32.mxu0 %vm79_vm1, %v64_v49  ;;  %v1057_v49 = vld [vmem:[%s1922_s5] sm:$0xff] }
 0x1ba   :  { %1380 = vmatmul.mubr.msk.f32.gmra.mrb[24].mxu0 %vm79_vm1, %v65_v50 }
 0x1bb   :  { %1382 = vmatprep.mubr.msk.f32.mxu0 %vm79_vm1, %v66_v51 }
 0x1be   :  { %1383 = vmatmul.mubr.msk.f32.gmra.mrb[26].mxu0 %vm79_vm1, %v67_v52 }
 0x1bf   :  { %v645_v54 = vld [vmem:[#allocation2 + $0x70] sm:$0xff] }
 0x1c9   :  { %v1405_v56 = vpop.f32.mrb[4].mxu1 }
 0x1ca   :  { %v566_v58 = vadd.f32 %v1405_v56, %v505_v55  ;;  %v549_v60 = vpop.f32.mrb[5].mxu1  ;;  %v646_v56 = vld [vmem:[#allocation2 + $0x78] sm:$0xff] }
 0x1cb   :  { %v564_v61 = vadd.f32 %v549_v60, %v503_v59  ;;  %v1406_v62 = vpop.f32.mrb[6].mxu1 }
 0x1cc   :  { %1488 = vtanh.f32 %v566_v58  ;;  %v567_v63 = vadd.f32 %v1406_v62, %v506_v57  ;;  %v552_v1 = vpop.f32.mrb[7].mxu1  ;;  %v643_v58 = vld [vmem:[#allocation2 + $0x60] sm:$0xff] }
 0x1cd   :  { %1490 = vtanh.f32 %v564_v61  ;;  %v565_v2 = vadd.f32 %v552_v1, %v504_v0 }
 0x1ce   :  { %1492 = vtanh.f32 %v567_v63  ;;  %v644_v63 = vld [vmem:[#allocation2 + $0x68] sm:$0xff] }
 0x1cf   :  { %1494 = vtanh.f32 %v565_v2 }
 0x1d6   :  { %v1489_v3 = vpop.eup %1488 }
 0x1d7   :  { %v1491_v4 = vpop.eup %1490 }
 0x1d8   :  { %v1493_v5 = vpop.eup %1492 }
 0x1d9   :  { %v1495_v6 = vpop.eup %1494  ;;  %v578_v8 = vpack.c.bf16 %v1493_v5, %v1489_v3 }
 0x1da   :  { %v577_v9 = vpack.c.bf16 %v1495_v6, %v1491_v4 }
 0x1dc   :  { %1411 = vmatprep.mubr.msk.bf16.mxu1 %vm405_vm2, %v577_v9  ;;  %v1369_v9 = vpop.f32.mrb[16].mxu0 }
 0x1dd   :  { %1412 = vmatmul.mubr.msk.bf16.vlgmr.msra.gmra.mrb[8].mxu1 %vm405_vm2, %v578_v8  ;;  %v332_v11 = vadd.f32 %v1369_v9, %v1658_v16  ;;  %v326_v12 = vpop.f32.mrb[17].mxu0 }
 0x1de   :  { %1416 = vmatpush3.bf16.msra.mxu1 %v1614_v7  ;;  %v327_v13 = vadd.f32 %v1658_v16, %v326_v12  ;;  %v1372_v14 = vpop.f32.mrb[18].mxu0 }
 0x1df   :  { %1417 = vmatprep.subr.bf16.mxu1 %v1623_v10  ;;  %423 = vst.msk [vmem:[#allocation2 + $0x88] sm:$0xff] %vm405_vm2, %v332_v11  ;;  %v342_v15 = vadd.f32 %v1372_v14, %v1658_v16  ;;  %v336_v17 = vpop.f32.mrb[19].mxu0 }
 0x1e0   :  { %422 = vst.msk [vmem:[#allocation2 + $0x80] sm:$0xff] %vm405_vm2, %v327_v13  ;;  %v337_v18 = vadd.f32 %v1658_v16, %v336_v17  ;;  %v69_v17 = vld [vmem:[%s1918_s0 + $0xe8] sm:$0xff] }
 0x1e1   :  { %425 = vst.msk [vmem:[#allocation2 + $0x98] sm:$0xff] %vm405_vm2, %v342_v15 }
 0x1e2   :  { %1418 = vmatpush3.bf16.msra.mxu1 %v1623_v10  ;;  %424 = vst.msk [vmem:[#allocation2 + $0x90] sm:$0xff] %vm405_vm2, %v337_v18  ;;  %v70_v18 = vld [vmem:[%s1918_s0 + $0xf0] sm:$0xff] }
 0x1e3   :  { %1423 = vmatprep.subr.bf16.mxu1 %v1614_v7 }
 0x1e9   :  { %v715_v23 = vld [vmem:[#allocation2 + $0x90] sm:$0xff] }
 0x2b0   :  { %v1413_v25 = vpop.f32.mrb[8].mxu1 }
 0x2b1   :  { %v636_v27 = vadd.f32 %v1413_v25, %v575_v24  ;;  %v619_v29 = vpop.f32.mrb[9].mxu1  ;;  %v716_v25 = vld [vmem:[#allocation2 + $0x98] sm:$0xff] }
 0x2b2   :  { %v634_v30 = vadd.f32 %v619_v29, %v573_v28  ;;  %v1414_v31 = vpop.f32.mrb[10].mxu1 }
 0x2b3   :  { %1496 = vtanh.f32 %v636_v27  ;;  %v637_v32 = vadd.f32 %v1414_v31, %v576_v26  ;;  %v622_v34 = vpop.f32.mrb[11].mxu1  ;;  %v713_v27 = vld [vmem:[#allocation2 + $0x80] sm:$0xff] }
 0x2b4   :  { %1498 = vtanh.f32 %v634_v30  ;;  %v635_v35 = vadd.f32 %v622_v34, %v574_v33 }
 0x2b5   :  { %1500 = vtanh.f32 %v637_v32  ;;  %v714_v32 = vld [vmem:[#allocation2 + $0x88] sm:$0xff] }
 0x2b6   :  { %1502 = vtanh.f32 %v635_v35 }
 0x2bd   :  { %v1497_v36 = vpop.eup %1496 }
 0x2be   :  { %v1499_v37 = vpop.eup %1498 }
 0x2bf   :  { %v1501_v38 = vpop.eup %1500 }
 0x2c0   :  { %v1503_v39 = vpop.eup %1502  ;;  %v648_v40 = vpack.c.bf16 %v1501_v38, %v1497_v36 }
 0x2c1   :  { %v647_v41 = vpack.c.bf16 %v1503_v39, %v1499_v37 }
 0x2c3   :  { %1419 = vmatprep.mubr.msk.bf16.mxu1 %vm405_vm2, %v647_v41  ;;  %v1375_v41 = vpop.f32.mrb[20].mxu0 }
 0x2c4   :  { %1420 = vmatmul.mubr.msk.bf16.vlgmr.msra.gmra.mrb[12].mxu1 %vm405_vm2, %v648_v40  ;;  %v352_v42 = vadd.f32 %v1375_v41, %v1658_v16  ;;  %v346_v43 = vpop.f32.mrb[21].mxu0 }
 0x2c5   :  { %1424 = vmatpush3.bf16.msra.mxu1 %v1614_v7  ;;  %v347_v44 = vadd.f32 %v1658_v16, %v346_v43  ;;  %v1378_v45 = vpop.f32.mrb[22].mxu0 }
 0x2c6   :  { %1425 = vmatprep.subr.bf16.mxu1 %v1623_v10  ;;  %427 = vst.msk [vmem:[#allocation2 + $0xa8] sm:$0xff] %vm405_vm2, %v352_v42  ;;  %v362_v46 = vadd.f32 %v1378_v45, %v1658_v16  ;;  %v356_v47 = vpop.f32.mrb[23].mxu0 }
 0x2c7   :  { %426 = vst.msk [vmem:[#allocation2 + $0xa0] sm:$0xff] %vm405_vm2, %v347_v44  ;;  %v357_v48 = vadd.f32 %v1658_v16, %v356_v47  ;;  %v993_v47 = vld [vmem:[%s1921_s1 + $0x8] sm:$0xff] }
 0x2c8   :  { %429 = vst.msk [vmem:[#allocation2 + $0xb8] sm:$0xff] %vm405_vm2, %v362_v46  ;;  %v992_v46 = vld [vmem:[%s1921_s1] sm:$0xff] }
 0x2c9   :  { %1426 = vmatpush3.bf16.msra.mxu1 %v1623_v10  ;;  %428 = vst.msk [vmem:[#allocation2 + $0xb0] sm:$0xff] %vm405_vm2, %v357_v48  ;;  %v996_v48 = vpack.c.bf16 %v993_v47, %v992_v46 }
 0x2ca   :  { %1431 = vmatprep.subr.bf16.mxu1 %v1614_v7 }
 0x2d0   :  { %v785_v53 = vld [vmem:[#allocation2 + $0xb0] sm:$0xff] }
 0x397   :  { %v1421_v55 = vpop.f32.mrb[12].mxu1 }
 0x398   :  { %v706_v57 = vadd.f32 %v1421_v55, %v645_v54  ;;  %v689_v59 = vpop.f32.mrb[13].mxu1  ;;  %v786_v55 = vld [vmem:[#allocation2 + $0xb8] sm:$0xff] }
 0x399   :  { %v704_v60 = vadd.f32 %v689_v59, %v643_v58  ;;  %v1422_v61 = vpop.f32.mrb[14].mxu1 }
 0x39a   :  { %1504 = vtanh.f32 %v706_v57  ;;  %v707_v62 = vadd.f32 %v1422_v61, %v646_v56  ;;  %v692_v0 = vpop.f32.mrb[15].mxu1  ;;  %v783_v57 = vld [vmem:[#allocation2 + $0xa0] sm:$0xff] }
 0x39b   :  { %1506 = vtanh.f32 %v704_v60  ;;  %v705_v1 = vadd.f32 %v692_v0, %v644_v63 }
 0x39c   :  { %1508 = vtanh.f32 %v707_v62  ;;  %v784_v62 = vld [vmem:[#allocation2 + $0xa8] sm:$0xff] }
 0x39d   :  { %1510 = vtanh.f32 %v705_v1 }
 0x3a4   :  { %v1505_v2 = vpop.eup %1504 }
 0x3a5   :  { %v1507_v3 = vpop.eup %1506 }
 0x3a6   :  { %v1509_v4 = vpop.eup %1508 }
 0x3a7   :  { %v1511_v5 = vpop.eup %1510  ;;  %v718_v6 = vpack.c.bf16 %v1509_v4, %v1505_v2 }
 0x3a8   :  { %v717_v8 = vpack.c.bf16 %v1511_v5, %v1507_v3 }
 0x3aa   :  { %1427 = vmatprep.mubr.msk.bf16.mxu1 %vm405_vm2, %v717_v8  ;;  %v1381_v8 = vpop.f32.mrb[24].mxu0 }
 0x3ab   :  { %1428 = vmatmul.mubr.msk.bf16.vlgmr.msra.gmra.mrb[16].mxu1 %vm405_vm2, %v718_v6  ;;  %v372_v9 = vadd.f32 %v1381_v8, %v1658_v16  ;;  %v366_v11 = vpop.f32.mrb[25].mxu0 }
 0x3ac   :  { %1432 = vmatpush3.bf16.msra.mxu1 %v1614_v7  ;;  %v367_v12 = vadd.f32 %v1658_v16, %v366_v11  ;;  %v1384_v13 = vpop.f32.mrb[26].mxu0  ;;  %v1060_v11 = vld [vmem:[%s1922_s5 + $0x18] sm:$0xff] }
 0x3ad   :  { %1433 = vmatprep.subr.bf16.mxu1 %v1623_v10  ;;  %431 = vst.msk [vmem:[#allocation2 + $0xc8] sm:$0xff] %vm405_vm2, %v372_v9  ;;  %v382_v14 = vadd.f32 %v1384_v13, %v1658_v16  ;;  %v376_v15 = vpop.f32.mrb[27].mxu0  ;;  %v1059_v9 = vld [vmem:[%s1922_s5 + $0x10] sm:$0xff] }
 0x3ae   :  { %430 = vst.msk [vmem:[#allocation2 + $0xc0] sm:$0xff] %vm405_vm2, %v367_v12  ;;  %v1062_v12 = vpack.c.bf16 %v1060_v11, %v1059_v9 }
 0x3af   :  { %433 = vst.msk [vmem:[#allocation2 + $0xd8] sm:$0xff] %vm405_vm2, %v382_v14 }
 0x3b0   :  { %1434 = vmatpush3.bf16.msra.mxu1 %v1623_v10 }
 0x3b1   :  { %1439 = vmatprep.subr.bf16.mxu1 %v1614_v7 }
 0x3b6   :  { %v856_v22 = vld [vmem:[#allocation2 + $0xd8] sm:$0xff] }
 0x47e   :  { %v1429_v24 = vpop.f32.mrb[16].mxu1 }
 0x47f   :  { %v776_v26 = vadd.f32 %v1429_v24, %v715_v23  ;;  %v759_v28 = vpop.f32.mrb[17].mxu1  ;;  %v853_v24 = vld [vmem:[#allocation2 + $0xc0] sm:$0xff] }
 0x480   :  { %v774_v29 = vadd.f32 %v759_v28, %v713_v27  ;;  %v1430_v30 = vpop.f32.mrb[18].mxu1 }
 0x481   :  { %1512 = vtanh.f32 %v776_v26  ;;  %v777_v31 = vadd.f32 %v1430_v30, %v716_v25  ;;  %v762_v33 = vpop.f32.mrb[19].mxu1 }
 0x482   :  { %1514 = vtanh.f32 %v774_v29  ;;  %v775_v34 = vadd.f32 %v762_v33, %v714_v32  ;;  %v854_v29 = vld [vmem:[#allocation2 + $0xc8] sm:$0xff] }
 0x483   :  { %1516 = vtanh.f32 %v777_v31 }
 0x484   :  { %1518 = vtanh.f32 %v775_v34 }
 0x48b   :  { %v1513_v35 = vpop.eup %1512 }
 0x48c   :  { %v1515_v36 = vpop.eup %1514 }
 0x48d   :  { %v1517_v37 = vpop.eup %1516 }
 0x48e   :  { %v1519_v38 = vpop.eup %1518  ;;  %v788_v39 = vpack.c.bf16 %v1517_v37, %v1513_v35 }
 0x48f   :  { %v787_v40 = vpack.c.bf16 %v1519_v38, %v1515_v36 }
 0x491   :  { %1435 = vmatprep.mubr.msk.bf16.mxu1 %vm405_vm2, %v787_v40 }
 0x492   :  { %1436 = vmatmul.mubr.msk.bf16.vlgmr.msra.gmra.mrb[20].mxu1 %vm405_vm2, %v788_v39 }
 0x493   :  { %1440 = vmatpush3.bf16.msra.mxu1 %v1614_v7 }
 0x494   :  { %1441 = vmatprep.subr.bf16.mxu1 %v1623_v10 }
 0x497   :  { %1442 = vmatpush3.bf16.msra.mxu1 %v1623_v10 }
 0x498   :  { %1447 = vmatprep.subr.bf16.mxu1 %v1614_v7 }
 0x565   :  { %v1437_v54 = vpop.f32.mrb[20].mxu1 }
 0x566   :  { %v846_v56 = vadd.f32 %v1437_v54, %v785_v53  ;;  %v829_v58 = vpop.f32.mrb[21].mxu1 }
 0x567   :  { %v844_v59 = vadd.f32 %v829_v58, %v783_v57  ;;  %v1438_v60 = vpop.f32.mrb[22].mxu1 }
 0x568   :  { %1520 = vtanh.f32 %v846_v56  ;;  %v847_v61 = vadd.f32 %v1438_v60, %v786_v55  ;;  %v832_v63 = vpop.f32.mrb[23].mxu1 }
 0x569   :  { %1522 = vtanh.f32 %v844_v59  ;;  %v845_v0 = vadd.f32 %v832_v63, %v784_v62 }
 0x56a   :  { %1524 = vtanh.f32 %v847_v61 }
 0x56b   :  { %1526 = vtanh.f32 %v845_v0 }
 0x572   :  { %v1521_v1 = vpop.eup %1520 }
 0x573   :  { %v1523_v2 = vpop.eup %1522 }
 0x574   :  { %v1525_v3 = vpop.eup %1524 }
 0x575   :  { %v1527_v4 = vpop.eup %1526  ;;  %v858_v5 = vpack.c.bf16 %v1525_v3, %v1521_v1 }
 0x576   :  { %v857_v6 = vpack.c.bf16 %v1527_v4, %v1523_v2 }
 0x578   :  { %1443 = vmatprep.mubr.msk.bf16.mxu1 %vm405_vm2, %v857_v6  ;;  %v995_v6 = vld [vmem:[%s1921_s1 + $0x18] sm:$0xff] }
 0x579   :  { %1444 = vmatmul.mubr.msk.bf16.vlgmr.msra.gmra.mrb[24].mxu1 %vm405_vm2, %v858_v5  ;;  %v994_v5 = vld [vmem:[%s1921_s1 + $0x10] sm:$0xff] }
 0x57a   :  { %1448 = vmatpush3.bf16.msra.mxu1 %v1614_v7  ;;  %v377_v7 = vadd.f32 %v1658_v16, %v376_v15  ;;  %v997_v8 = vpack.c.bf16 %v995_v6, %v994_v5 }
 0x57b   :  { %1449 = vmatprep.subr.bf16.mxu1 %v1623_v10 }
 0x57c   :  { %432 = vst.msk [vmem:[#allocation2 + $0xd0] sm:$0xff] %vm405_vm2, %v377_v7 }
 0x57e   :  { %1450 = vmatpush3.bf16.msra.mxu1 %v1623_v10  ;;  %v68_v10 = vld [vmem:[%s1918_s0 + $0xe0] sm:$0xff] }
 0x57f   :  { %1385 = vmatprep.mubr.msk.f32.mxu0 %vm79_vm1, %v68_v10 }
 0x580   :  { %1386 = vmatmul.mubr.msk.f32.gmra.mrb[28].mxu0 %vm79_vm1, %v69_v17 }
 0x581   :  { %1388 = vmatprep.mubr.msk.f32.mxu0 %vm79_vm1, %v70_v18  ;;  %v1131_v18 = vld [vmem:[%s1923_s7] sm:$0xff] }
 0x583   :  { %v855_v20 = vld [vmem:[#allocation2 + $0xd0] sm:$0xff] }
 0x584   :  { %1389 = vmatmul.mubr.msk.f32.gmra.mrb[30].mxu0 %vm79_vm1, %v71_v19  ;;  %v1132_v19 = vld [vmem:[%s1923_s7 + $0x8] sm:$0xff] }
 0x585   :  { %1459 = vmatprep.mubr.msk.bf16.mxu0 %vm405_vm2, %v996_v48 }
 0x64c   :  { %v1445_v21 = vpop.f32.mrb[24].mxu1 }
 0x64d   :  { %v916_v23 = vadd.f32 %v1445_v21, %v855_v20  ;;  %v899_v25 = vpop.f32.mrb[25].mxu1  ;;  %v1135_v20 = vpack.c.bf16 %v1132_v19, %v1131_v18  ;;  %v1133_v21 = vld [vmem:[%s1923_s7 + $0x10] sm:$0xff] }
 0x64e   :  { %v914_v26 = vadd.f32 %v899_v25, %v853_v24  ;;  %v1446_v27 = vpop.f32.mrb[26].mxu1  ;;  %v1258_v24 = vld [vmem:[%s1924_s6] ss:$0 sm:$0xff] }
 0x64f   :  { %1528 = vtanh.f32 %v916_v23  ;;  %v917_v28 = vadd.f32 %v1446_v27, %v856_v22  ;;  %v902_v30 = vpop.f32.mrb[27].mxu1  ;;  %v1134_v22 = vld [vmem:[%s1923_s7 + $0x18] sm:$0xff] }
 0x650   :  { %1530 = vtanh.f32 %v914_v26  ;;  %v915_v31 = vadd.f32 %v902_v30, %v854_v29  ;;  %v1136_v23 = vpack.c.bf16 %v1134_v22, %v1133_v21 }
 0x651   :  { %1532 = vtanh.f32 %v917_v28 }
 0x652   :  { %1534 = vtanh.f32 %v915_v31 }
 0x653   :  { %v1387_v38 = vpop.f32.mrb[28].mxu0 }
 0x654   :  { %v392_v39 = vadd.f32 %v1387_v38, %v1658_v16  ;;  %v386_v40 = vpop.f32.mrb[29].mxu0 }
 0x655   :  { %v387_v41 = vadd.f32 %v1658_v16, %v386_v40 }
 0x656   :  { %435 = vst.msk [vmem:[#allocation2 + $0xe8] sm:$0xff] %vm405_vm2, %v392_v39  ;;  %v1261_v39 = vld [vmem:[%s1925_s8] ss:$0 sm:$0xff] }
 0x657   :  { %434 = vst.msk [vmem:[#allocation2 + $0xe0] sm:$0xff] %vm405_vm2, %v387_v41  ;;  %v1390_v42 = vpop.f32.mrb[30].mxu0 }
 0x658   :  { %v402_v43 = vadd.f32 %v1390_v42, %v1658_v16  ;;  %v396_v44 = vpop.f32.mrb[31].mxu0 }
 0x659   :  { %v1529_v32 = vpop.eup %1528  ;;  %v397_v45 = vadd.f32 %v1658_v16, %v396_v44  ;;  %v1058_v16 = vld [vmem:[%s1922_s5 + $0x8] sm:$0xff] }
 0x65a   :  { %v1531_v33 = vpop.eup %1530  ;;  %437 = vst.msk [vmem:[#allocation2 + $0xf8] sm:$0xff] %vm405_vm2, %v402_v43  ;;  %v1061_v50 = vpack.c.bf16 %v1058_v16, %v1057_v49 }
 0x65b   :  { %v1533_v34 = vpop.eup %1532  ;;  %436 = vst.msk [vmem:[#allocation2 + $0xf0] sm:$0xff] %vm405_vm2, %v397_v45 }
 0x65c   :  { %v1535_v35 = vpop.eup %1534  ;;  %v928_v36 = vpack.c.bf16 %v1533_v34, %v1529_v32  ;;  %1463 = vmatprep.subr.bf16.mxu1 %v1061_v50 }
 0x65d   :  { %v927_v37 = vpack.c.bf16 %v1535_v35, %v1531_v33  ;;  %v924_v57 = vld [vmem:[#allocation2 + $0xe8] sm:$0xff] }
 0x65e   :  { %v923_v52 = vld [vmem:[#allocation2 + $0xe0] sm:$0xff] }
 0x65f   :  { %1451 = vmatprep.mubr.msk.bf16.mxu1 %vm405_vm2, %v927_v37 }
 0x660   :  { %1452 = vmatmul.mubr.msk.bf16.vlgmr.msra.gmra.mrb[28].mxu1 %vm405_vm2, %v928_v36 }
 0x661   :  { %1464 = vmatpush3.bf16.msra.mxu1 %v1061_v50  ;;  %v926_v54 = vld [vmem:[#allocation2 + $0xf8] sm:$0xff] }
 0x662   :  { %v925_v51 = vld [vmem:[#allocation2 + $0xf0] sm:$0xff]  ;;  %1465 = vmatprep.subr.bf16.mxu1 %v1062_v12 }
 0x665   :  { %1466 = vmatpush3.bf16.msra.mxu1 %v1062_v12 }
 0x733   :  { %v1453_v53 = vpop.f32.mrb[28].mxu1 }
 0x734   :  { %v986_v55 = vadd.f32 %v1453_v53, %v925_v51  ;;  %v969_v56 = vpop.f32.mrb[29].mxu1 }
 0x735   :  { %v984_v58 = vadd.f32 %v969_v56, %v923_v52  ;;  %v1454_v59 = vpop.f32.mrb[30].mxu1 }
 0x736   :  { %1536 = vtanh.f32 %v986_v55  ;;  %v987_v60 = vadd.f32 %v1454_v59, %v926_v54  ;;  %v972_v61 = vpop.f32.mrb[31].mxu1 }
 0x737   :  { %1538 = vtanh.f32 %v984_v58  ;;  %v985_v62 = vadd.f32 %v972_v61, %v924_v57 }
 0x738   :  { %1540 = vtanh.f32 %v987_v60 }
 0x739   :  { %1542 = vtanh.f32 %v985_v62 }
 0x740   :  { %v1537_v63 = vpop.eup %1536 }
 0x741   :  { %v1539_v0 = vpop.eup %1538 }
 0x742   :  { %v1541_v1 = vpop.eup %1540 }
 0x743   :  { %v1543_v2 = vpop.eup %1542  ;;  %v999_v3 = vpack.c.bf16 %v1541_v1, %v1537_v63 }
 0x744   :  { %v998_v4 = vpack.c.bf16 %v1543_v2, %v1539_v0 }
 0x746   :  { %1455 = vmatprep.subr.bf16.mxu0 %v998_v4 }
 0x747   :  { %1456 = vmatpush3.bf16.msra.mxu0 %v998_v4 }
 0x748   :  { %1457 = vmatprep.subr.bf16.mxu0 %v999_v3 }
 0x74b   :  { %1458 = vmatpush3.bf16.msra.mxu0 %v999_v3 }
 0x74c   :  { %1471 = vmatprep.subr.bf16.mxu0 %v1135_v20 }
 0x74e   :  { %1460 = vmatmul.mubr.msk.bf16.vlgmr.msra.gmra.mrb[32].mxu0 %vm405_vm2, %v997_v8 }
 0x74f   :  { %1472 = vmatpush3.bf16.msra.mxu0 %v1135_v20 }
 0x750   :  { %1473 = vmatprep.subr.bf16.mxu0 %v1136_v23 }
 0x753   :  { %1474 = vmatpush3.bf16.msra.mxu0 %v1136_v23 }
 0x821   :  { %v1461_v13 = vpop.f32.mrb[32].mxu0 }
 0x822   :  { %v1040_v14 = vpop.f32.mrb[33].mxu0 }
 0x823   :  { %v1462_v15 = vpop.f32.mrb[34].mxu0 }
 0x824   :  { %v1056_v7 = vpack.c.bf16 %v1462_v15, %v1461_v13  ;;  %v1043_v10 = vpop.f32.mrb[35].mxu0 }
 0x825   :  { %v1055_v17 = vpack.c.bf16 %v1043_v10, %v1040_v14 }
 0x827   :  { %1467 = vmatprep.mubr.msk.bf16.mxu1 %vm405_vm2, %v1055_v17 }
 0x828   :  { %1468 = vmatmul.mubr.msk.bf16.vlgmr.msra.gmra.mrb[32].mxu1 %vm405_vm2, %v1056_v7 }
 0x8fb   :  { %v1469_v25 = vpop.f32.mrb[32].mxu1 }
 0x8fc   :  { %v1119_v26 = vadd.f32 %v1469_v25, %v1258_v24  ;;  %v1110_v27 = vpop.f32.mrb[33].mxu1 }
 0x8fd   :  { %v1111_v28 = vadd.f32 %v1258_v24, %v1110_v27  ;;  %v1470_v29 = vpop.f32.mrb[34].mxu1 }
 0x8fe   :  { %v1122_v30 = vadd.f32 %v1470_v29, %v1258_v24  ;;  %v1113_v31 = vpop.f32.mrb[35].mxu1  ;;  %v1127_v33 = vmax.f32 %v1119_v26, 0.0 }
 0x8ff   :  { %v1114_v32 = vadd.f32 %v1258_v24, %v1113_v31  ;;  %v1125_v35 = vmax.f32 %v1111_v28, 0.0 }
 0x900   :  { %v1128_v34 = vmax.f32 %v1122_v30, 0.0 }
 0x901   :  { %v1126_v36 = vmax.f32 %v1114_v32, 0.0 }
 0x902   :  { %v1130_v37 = vpack.c.bf16 %v1128_v34, %v1127_v33 }
 0x903   :  { %v1129_v38 = vpack.c.bf16 %v1126_v36, %v1125_v35 }
 0x905   :  { %1475 = vmatprep.mubr.msk.bf16.mxu0 %vm405_vm2, %v1129_v38 }
 0x906   :  { %1476 = vmatmul.mubr.msk.bf16.vlgmr.msra.gmra.mrb[36].mxu0 %vm405_vm2, %v1130_v37 }
 0x9d9   :  { %v1477_v40 = vpop.f32.mrb[36].mxu0 }
 0x9da   :  { %v1193_v41 = vadd.f32 %v1477_v40, %v1261_v39  ;;  %v1184_v42 = vpop.f32.mrb[37].mxu0 }
 0x9db   :  { %v1185_v43 = vadd.f32 %v1261_v39, %v1184_v42  ;;  %v1478_v44 = vpop.f32.mrb[38].mxu0 }
 0x9dc   :  { %1202 = vst.msk [vmem:[%s1926_s9 + $0x10] sm:$0xff] %vm1199_vm3, %v1193_v41  ;;  %v1196_v45 = vadd.f32 %v1478_v44, %v1261_v39  ;;  %v1187_v46 = vpop.f32.mrb[39].mxu0 }
 0x9dd   :  { %1200 = vst.msk [vmem:[%s1926_s9] sm:$0xff] %vm1199_vm3, %v1185_v43  ;;  %v1188_v47 = vadd.f32 %v1261_v39, %v1187_v46 }
 0x9de   :  { %1203 = vst.msk [vmem:[%s1926_s9 + $0x18] sm:$0xff] %vm1199_vm3, %v1196_v45 }
 0x9df   :  { %1201 = vst.msk [vmem:[%s1926_s9 + $0x8] sm:$0xff] %vm1199_vm3, %v1188_v47 }

</bundles_post_ra>
